<compile_context>
chip_gen: v7x
topology: tpu7x:2x2x1
jax: 0.10.0
libtpu: 0.0.40
codegen_flags: <defaults>
</compile_context>

<pallas_src>
import jax
import jax.numpy as jnp
from jax.experimental import pallas as pl
from jax.experimental.pallas import tpu as pltpu


def _round_up(x: int, m: int) -> int:
    return (x + m - 1) // m * m


# --------------------------------------------------------------------------- #
# Kernel
# --------------------------------------------------------------------------- #
def rnn_cell_kernel(x_ref, h_ref, wx_ref, wh_ref, b_ref, o_ref):
    # Two MXU matmuls (bf16 operands, f32 accumulate) into one accumulator,
    # bias add on the VPU, tanh on the EUP, cast on the store.
    acc = jnp.dot(x_ref[...], wx_ref[...], preferred_element_type=jnp.float32)
    acc = acc + jnp.dot(h_ref[...], wh_ref[...],
                        preferred_element_type=jnp.float32)
    acc = acc + b_ref[...]
    o_ref[...] = jnp.tanh(acc).astype(o_ref.dtype)


# --------------------------------------------------------------------------- #
# One-time parameter preparation (hoist out of any per-step loop)
# --------------------------------------------------------------------------- #
def prepare_rnn_cell_params(wx, bx, wh, bh, *, compute_dtype=jnp.bfloat16):
    """Transpose / pad / cast the two nn.Linear layers.  Call ONCE.

    wx : (H, I)  PyTorch nn.Linear layout (out_features, in_features)
    bx : (H,)
    wh : (H, H)
    bh : (H,)

    Returns:
      wx_t : (I, Hp) compute_dtype     Hp = round_up(H, 128)
      wh_t : (H, Hp) compute_dtype
      b    : (1, Hp) float32           (bx + bh, zero padded)

    Zero padding of the extra Hp-H output columns is exact: those columns
    produce tanh(0) = 0 and are sliced away by the caller.
    """
    H, I = wx.shape
    Hp = _round_up(H, 128)
    wx_t = jnp.pad(wx.T.astype(jnp.float32),
                   ((0, 0), (0, Hp - H))).astype(compute_dtype)
    wh_t = jnp.pad(wh.T.astype(jnp.float32),
                   ((0, 0), (0, Hp - H))).astype(compute_dtype)
    b = jnp.pad((bx + bh).astype(jnp.float32).reshape(1, H),
                ((0, 0), (0, Hp - H)))
    return wx_t, wh_t, b


# --------------------------------------------------------------------------- #
# Tile selection from an explicit VMEM byte budget
# --------------------------------------------------------------------------- #
def _pick_tiles(B, I, H, Hp, tb_max, th_max, budget_bytes):
    def footprint(tb, th):
        # Double-buffered in/out VMEM bytes: bf16 x/h tiles + bf16 weight tiles
        # + f32 bias row + f32 output tile.
        return 2 * (tb * (I + H) * 2 + (I + H) * th * 2 + th * 4 + tb * th * 4)

    # Hidden tile must be a multiple of 128 that divides Hp (lane-dense stores,
    # exact grid); prefer the largest one that fits the budget and th_max.
    th_choices = [128 * m for m in range(Hp // 128, 0, -1)
                  if Hp % (128 * m) == 0 and 128 * m <= th_max]
    if not th_choices:
        th_choices = [128]

    TB = _round_up(min(tb_max, _round_up(B, 8)), 8)
    TH = th_choices[-1]
    for th in th_choices:
        if footprint(TB, th) <= budget_bytes:
            TH = th
            break
    while footprint(TB, TH) > budget_bytes and TB > 8:
        TB = max(8, _round_up(TB // 2, 8))

    # v7x megacore: if everything collapsed to a single grid point but the
    # problem is large enough, split one 'parallel' axis so both TensorCores
    # get work.  (Tiny problems like the demo stay at a single tile.)
    if (_round_up(B, TB) // TB) * (Hp // TH) == 1:
        if TH % 256 == 0:
            TH //= 2
        elif TB % 16 == 0 and TB >= 16:
            TB //= 2
    return TB, TH


# --------------------------------------------------------------------------- #
# Single-step apply using prepared params
# --------------------------------------------------------------------------- #
def rnn_cell_apply(wx_t, wh_t, b, x, hx=None, *,
                   compute_dtype=jnp.bfloat16, out_dtype=None,
                   tb_max=256, th_max=512,
                   vmem_budget_bytes=12 * 1024 * 1024):
    """One RNNCell step:  tanh(x @ Wx^T + hx @ Wh^T + (bx + bh))."""
    B, I = x.shape
    H = wh_t.shape[0]
    Hp = wx_t.shape[1]
    assert wx_t.shape[0] == I and wh_t.shape[1] == Hp and b.shape == (1, Hp)
    if hx is None:
        hx = jnp.zeros((B, H), dtype=x.dtype)
    out_dtype = x.dtype if out_dtype is None else out_dtype

    TB, TH = _pick_tiles(B, I, H, Hp, tb_max, th_max, vmem_budget_bytes)
    Bp = _round_up(B, TB)

    xp = x.astype(compute_dtype)
    hp = hx.astype(compute_dtype)
    if Bp != B:
        xp = jnp.pad(xp, ((0, Bp - B), (0, 0)))
        hp = jnp.pad(hp, ((0, Bp - B), (0, 0)))

    # Batch axis is the innermost (minor) grid dimension so the weight / bias
    # block indices are unchanged between consecutive grid steps -> Pallas keeps
    # the weight tiles resident in VMEM (no per-batch-tile re-DMA from HBM).
    grid = (Hp // TH, Bp // TB)
    out = pl.pallas_call(
        rnn_cell_kernel,
        out_shape=jax.ShapeDtypeStruct((Bp, Hp), out_dtype),
        grid_spec=pltpu.PrefetchScalarGridSpec(
            num_scalar_prefetch=0,
            grid=grid,
            in_specs=[
                pl.BlockSpec((TB, I), lambda j, i: (i, 0)),   # x tile (streamed)
                pl.BlockSpec((TB, H), lambda j, i: (i, 0)),   # h tile (streamed)
                pl.BlockSpec((I, TH), lambda j, i: (0, j)),   # Wx^T (resident over i)
                pl.BlockSpec((H, TH), lambda j, i: (0, j)),   # Wh^T (resident over i)
                pl.BlockSpec((1, TH), lambda j, i: (0, j)),   # fused bias row
            ],
            out_specs=pl.BlockSpec((TB, TH), lambda j, i: (i, j)),
        ),
        compiler_params=pltpu.CompilerParams(
            dimension_semantics=("parallel", "parallel")),
    )(xp, hp, wx_t, wh_t, b)

    if Bp == B and Hp == H:
        return out
    return out[:B, :H]


# --------------------------------------------------------------------------- #
# Convenience wrapper matching the PyTorch module's forward
# --------------------------------------------------------------------------- #
def rnn_cell(x, hx, wx, bx, wh, bh, *, nonlinearity="tanh"):
    """Matches RNNCell.forward. For loops over time, hoist
    prepare_rnn_cell_params() out of the loop and call rnn_cell_apply()."""
    if nonlinearity not in ("tanh", "relu"):
        raise ValueError("Invalid nonlinearity!")
    # NOTE: the reference module applies torch.tanh for BOTH branches (the
    # 'relu' branch also calls tanh), so we faithfully always use tanh.
    wx_t, wh_t, b = prepare_rnn_cell_params(wx, bx, wh, bh)
    return rnn_cell_apply(wx_t, wh_t, b, x, hx)


if __name__ == "__main__":
    # Small shapes consistent with the module: batch=8, input_size=32, hidden=32.
    B, I, H = 8, 32, 32
    key = jax.random.PRNGKey(0)
    k_x, k_h, k_wx, k_bx, k_wh, k_bh = jax.random.split(key, 6)

    x = jax.random.normal(k_x, (B, I), dtype=jnp.float32)
    hx = jax.random.normal(k_h, (B, H), dtype=jnp.float32)

    # Params mimicking nn.Linear init: U(-1/sqrt(fan_in), +1/sqrt(fan_in)).
    bound_x = 1.0 / jnp.sqrt(jnp.float32(I))
    bound_h = 1.0 / jnp.sqrt(jnp.float32(H))
    wx = jax.random.uniform(k_wx, (H, I), minval=-bound_x, maxval=bound_x,
                            dtype=jnp.float32)
    bx = jax.random.uniform(k_bx, (H,), minval=-bound_x, maxval=bound_x,
                            dtype=jnp.float32)
    wh = jax.random.uniform(k_wh, (H, H), minval=-bound_h, maxval=bound_h,
                            dtype=jnp.float32)
    bh = jax.random.uniform(k_bh, (H,), minval=-bound_h, maxval=bound_h,
                            dtype=jnp.float32)

    # Prepare params once (hoisted out of the per-step path), then run the kernel.
    wx_t, wh_t, b_fused = prepare_rnn_cell_params(wx, bx, wh, bh)
    y = rnn_cell_apply(wx_t, wh_t, b_fused, x, hx)
    y = jax.block_until_ready(y)
    assert y.shape == (B, H)

    # Reference 1: full-f32 math (loose tolerance: kernel matmuls run in bf16).
    y_ref_f32 = jnp.tanh(x @ wx.T + bx + hx @ wh.T + bh)
    assert jnp.allclose(y, y_ref_f32, atol=3e-2, rtol=3e-2)

    # Reference 2: same bf16-operand / f32-accumulate math (tight tolerance).
    xb, hb = x.astype(jnp.bfloat16), hx.astype(jnp.bfloat16)
    wxb, whb = wx.T.astype(jnp.bfloat16), wh.T.astype(jnp.bfloat16)
    y_ref_bf = jnp.tanh(
        jnp.dot(xb, wxb, preferred_element_type=jnp.float32)
        + jnp.dot(hb, whb, preferred_element_type=jnp.float32)
        + (bx + bh))
    assert jnp.allclose(y, y_ref_bf, atol=2e-3, rtol=2e-3)

    print("KERNEL_OK")
</pallas_src>

<mosaic_0001>
module attributes {stable_mosaic.version = 11 : i64} {
  func.func @rnn_cell_kernel(%arg0: i32, %arg1: i32, %arg2: memref<8x32xbf16, #tpu.memory_space<vmem>>, %arg3: memref<8x32xbf16, #tpu.memory_space<vmem>>, %arg4: memref<32x128xbf16, #tpu.memory_space<vmem>>, %arg5: memref<32x128xbf16, #tpu.memory_space<vmem>>, %arg6: memref<1x128xf32, #tpu.memory_space<vmem>>, %arg7: memref<8x128xf32, #tpu.memory_space<vmem>>) attributes {dimension_semantics = [#tpu.dimension_semantics<parallel>, #tpu.dimension_semantics<parallel>], iteration_bounds = array<i64: 1, 1>, scalar_prefetch = 0 : i64, scratch_operands = 0 : i64, tpu.core_type = #tpu.core_type<tc>, window_params = [{transform_indices = @transform_0, window_bounds = array<i64: 8, 32>}, {transform_indices = @transform_1, window_bounds = array<i64: 8, 32>}, {transform_indices = @transform_2, window_bounds = array<i64: 32, 128>}, {transform_indices = @transform_3, window_bounds = array<i64: 32, 128>}, {transform_indices = @transform_4, window_bounds = array<i64: 1, 128>}, {transform_indices = @transform_5, window_bounds = array<i64: 8, 128>}]} {
    %c0 = arith.constant 0 : index
    %c0_0 = arith.constant 0 : index
    %0 = vector.load %arg2[%c0, %c0_0] : memref<8x32xbf16, #tpu.memory_space<vmem>>, vector<8x32xbf16>
    %c0_1 = arith.constant 0 : index
    %c0_2 = arith.constant 0 : index
    %1 = vector.load %arg4[%c0_1, %c0_2] : memref<32x128xbf16, #tpu.memory_space<vmem>>, vector<32x128xbf16>
    %cst = arith.constant dense<0.000000e+00> : vector<8x128xf32>
    %2 = tpu.matmul %0, %1, %cst {dimension_numbers = #tpu.dot_dimension_numbers<[1], [0], [0], [1], [0, 0, 1, 1], [], []>} : vector<8x32xbf16>, vector<32x128xbf16>, vector<8x128xf32> -> vector<8x128xf32>
    %c0_3 = arith.constant 0 : index
    %c0_4 = arith.constant 0 : index
    %3 = vector.load %arg3[%c0_3, %c0_4] : memref<8x32xbf16, #tpu.memory_space<vmem>>, vector<8x32xbf16>
    %c0_5 = arith.constant 0 : index
    %c0_6 = arith.constant 0 : index
    %4 = vector.load %arg5[%c0_5, %c0_6] : memref<32x128xbf16, #tpu.memory_space<vmem>>, vector<32x128xbf16>
    %cst_7 = arith.constant dense<0.000000e+00> : vector<8x128xf32>
    %5 = tpu.matmul %3, %4, %cst_7 {dimension_numbers = #tpu.dot_dimension_numbers<[1], [0], [0], [1], [0, 0, 1, 1], [], []>} : vector<8x32xbf16>, vector<32x128xbf16>, vector<8x128xf32> -> vector<8x128xf32>
    %6 = arith.addf %2, %5 : vector<8x128xf32>
    %c0_8 = arith.constant 0 : index
    %c0_9 = arith.constant 0 : index
    %7 = vector.load %arg6[%c0_8, %c0_9] : memref<1x128xf32, #tpu.memory_space<vmem>>, vector<1x128xf32>
    %8 = vector.broadcast %7 : vector<1x128xf32> to vector<8x128xf32>
    %9 = arith.addf %6, %8 : vector<8x128xf32>
    %10 = math.tanh %9 : vector<8x128xf32>
    %c0_10 = arith.constant 0 : index
    %c0_11 = arith.constant 0 : index
    %11 = vector.load %arg7[%c0_10, %c0_11] : memref<8x128xf32, #tpu.memory_space<vmem>>, vector<8x128xf32>
    tpu.vector_store %arg7[%c0_10, %c0_11], %10 {strides = array<i32>} : memref<8x128xf32, #tpu.memory_space<vmem>>, vector<8x128xf32>,
    return
  }
  func.func @transform_0(%arg0: i32, %arg1: i32) -> (i32, i32) {
    %c0_i32 = arith.constant 0 : i32
    %c0_i32_0 = arith.constant 0 : i32
    return %arg1, %c0_i32 : i32, i32
  }
  func.func @transform_1(%arg0: i32, %arg1: i32) -> (i32, i32) {
    %c0_i32 = arith.constant 0 : i32
    %c0_i32_0 = arith.constant 0 : i32
    return %arg1, %c0_i32 : i32, i32
  }
  func.func @transform_2(%arg0: i32, %arg1: i32) -> (i32, i32) {
    %c0_i32 = arith.constant 0 : i32
    %c0_i32_0 = arith.constant 0 : i32
    return %c0_i32, %arg0 : i32, i32
  }
  func.func @transform_3(%arg0: i32, %arg1: i32) -> (i32, i32) {
    %c0_i32 = arith.constant 0 : i32
    %c0_i32_0 = arith.constant 0 : i32
    return %c0_i32, %arg0 : i32, i32
  }
  func.func @transform_4(%arg0: i32, %arg1: i32) -> (i32, i32) {
    %c0_i32 = arith.constant 0 : i32
    %c0_i32_0 = arith.constant 0 : i32
    return %c0_i32, %arg0 : i32, i32
  }
  func.func @transform_5(%arg0: i32, %arg1: i32) -> (i32, i32) {
    %c0_i32 = arith.constant 0 : i32
    return %arg1, %arg0 : i32, i32
  }
}

</mosaic_0001>

<bundles_post_ra>
// kernel: tpu_custom_call.1
= control target key start
LH: loop header
LB: loop body
LE: loop exit
PB: predicated region body
PF: predicated region fallthrough
CT: control target
= control target key end

     0   :  { %10 = vsyncpa [#allocation3], 0  ;;  %s485_s0 = inlined_call_operand.hbm [shape: bf16[8,32], index: 0, kind: input, shape index: {}]   ;;  %s486_s1 = inlined_call_operand.hbm [shape: bf16[8,32], index: 1, kind: input, shape index: {}]   ;;  %s487_s2 = inlined_call_operand.hbm [shape: bf16[32,128], index: 2, kind: input, shape index: {}]   ;;  %s488_s3 = inlined_call_operand.hbm [shape: bf16[32,128], index: 3, kind: input, shape index: {}]   ;;  %s489_s4 = inlined_call_operand.vmem [shape: f32[1,128], index: 4, kind: input, shape index: {}]   ;;  %s490_s5 = inlined_call_operand.hbm [shape: f32[8,128], index: 5, kind: output, shape index: {}]  }
   0x1   :  { %11 = vsyncpa [#allocation6], 0 }
   0x2   :  { %12 = vsyncpa [#allocation9], 0 }
   0x3   :  { %13 = vsyncpa [#allocation4], 0  ;;  %s383_s18 = smov [#allocation5]   ;;  %s384_s20 = smov [#allocation2]  }
   0x4   :  { %s30_s19 = sshll.u32 %s383_s18, 4  ;;  %s20_s21 = sshll.u32 %s384_s20, 4  ;;  %s31_s19 = int_to_ptr.vmem [resolvable:$true] %s30_s19  ;;  %s21_s21 = int_to_ptr.vmem [resolvable:$true] %s20_s21 }
   0x5   :  { %s265_s24 = scalar_lea.hbm %s486_s1, 64 }
   0x6   :  { %p266_p0 = scmp.ne.s32.totalorder %s486_s1, %s265_s24  ;;  %p269_p1 = scmp.lt.u32.totalorder %s265_s24, %s486_s1 }
   0x8   :  { %p271_p2 = pnand %p269_p1, %p266_p0 }
   0xa   :  { %274 = shalt.err (!%p271_p2)
}
   0xb   :  { %s275_s29 = scalar_lea.vmem %s31_s19, 64  ;;  %p280_p4 = scmp.lt.s32.totalorder %s31_s19, %s31_s19 }
   0xc   :  { %p276_p3 = scmp.ne.s32.totalorder %s31_s19, %s275_s29  ;;  %p281_p5 = scmp.lt.s32.totalorder %s275_s29, %s275_s29 }
   0xe   :  { %p282_p6 = por %p281_p5, %p280_p4 }
  0x10   :  { %p283_p7 = pnand %p282_p6, %p276_p3 }
  0x12   :  { %286 = shalt.err (!%p283_p7)
}
  0x13   :  { %33 = dma.hbm_to_vmem [thread:$0]  %s486_s1, 64, %s31_s19, [#allocation6]  }
  0x14   :  { %s287_s9 = scalar_lea.hbm %s485_s0, 64 }
  0x15   :  { %p288_p8 = scmp.ne.s32.totalorder %s485_s0, %s287_s9  ;;  %p291_p9 = scmp.lt.u32.totalorder %s287_s9, %s485_s0 }
  0x17   :  { %p293_p10 = pnand %p291_p9, %p288_p8 }
  0x19   :  { %296 = shalt.err (!%p293_p10)
}
  0x1a   :  { %s297_s14 = scalar_lea.vmem %s21_s21, 64  ;;  %p302_p12 = scmp.lt.s32.totalorder %s21_s21, %s21_s21 }
  0x1b   :  { %p298_p11 = scmp.ne.s32.totalorder %s21_s21, %s297_s14  ;;  %p303_p13 = scmp.lt.s32.totalorder %s297_s14, %s297_s14 }
  0x1d   :  { %p304_p0 = por %p303_p13, %p302_p12 }
  0x1f   :  { %p305_p1 = pnand %p304_p0, %p298_p11 }
  0x21   :  { %308 = shalt.err (!%p305_p1)
}
  0x22   :  { %23 = dma.hbm_to_vmem [thread:$0]  %s485_s0, 64, %s21_s21, [#allocation3]  }
  0x23   :  { %s385_s16 = smov [#allocation7]   ;;  %s309_s20 = scalar_lea.hbm %s487_s2, 256 }
  0x24   :  { %s39_s17 = sshll.u32 %s385_s16, 4  ;;  %p310_p2 = scmp.ne.s32.totalorder %s487_s2, %s309_s20  ;;  %s40_s17 = int_to_ptr.vmem [resolvable:$true] %s39_s17 }
  0x25   :  { %p313_p3 = scmp.lt.u32.totalorder %s309_s20, %s487_s2 }
  0x27   :  { %p315_p4 = pnand %p313_p3, %p310_p2 }
  0x29   :  { %318 = shalt.err (!%p315_p4)
}
  0x2a   :  { %s319_s26 = scalar_lea.vmem %s40_s17, 256  ;;  %p324_p6 = scmp.lt.s32.totalorder %s40_s17, %s40_s17 }
  0x2b   :  { %p320_p5 = scmp.ne.s32.totalorder %s40_s17, %s319_s26  ;;  %p325_p7 = scmp.lt.s32.totalorder %s319_s26, %s319_s26 }
  0x2d   :  { %p326_p8 = por %p325_p7, %p324_p6 }
  0x2f   :  { %p327_p9 = pnand %p326_p8, %p320_p5 }
  0x31   :  { %330 = shalt.err (!%p327_p9)
}
  0x32   :  { %s386_s0 = smov 64   ;;  %s387_s21 = smov 4  }
  0x33   :  { %45 = dma.hbm_to_vmem [thread:$0]  %s487_s2, 256, %s40_s17, [#allocation6], %s386_s0, %s386_s0, %s387_s21  }
  0x34   :  { %s388_s29 = smov [#allocation8]   ;;  %s331_s8 = scalar_lea.hbm %s488_s3, 256 }
  0x35   :  { %s51_s30 = sshll.u32 %s388_s29, 4  ;;  %p332_p10 = scmp.ne.s32.totalorder %s488_s3, %s331_s8  ;;  %s52_s30 = int_to_ptr.vmem [resolvable:$true] %s51_s30 }
  0x36   :  { %p335_p11 = scmp.lt.u32.totalorder %s331_s8, %s488_s3 }
  0x38   :  { %p337_p12 = pnand %p335_p11, %p332_p10 }
  0x3a   :  { %340 = shalt.err (!%p337_p12)
}
  0x3b   :  { %s341_s13 = scalar_lea.vmem %s52_s30, 256  ;;  %p346_p0 = scmp.lt.s32.totalorder %s52_s30, %s52_s30 }
  0x3c   :  { %p342_p13 = scmp.ne.s32.totalorder %s52_s30, %s341_s13  ;;  %p347_p1 = scmp.lt.s32.totalorder %s341_s13, %s341_s13 }
  0x3e   :  { %p348_p2 = por %p347_p1, %p346_p0 }
  0x40   :  { %p349_p3 = pnand %p348_p2, %p342_p13 }
  0x42   :  { %352 = shalt.err (!%p349_p3)
}
  0x43   :  { %57 = dma.hbm_to_vmem [thread:$0]  %s488_s3, 256, %s52_s30, [#allocation9], %s386_s0, %s386_s0, %s387_s21  }
  0x44   :  { %375 = dma.done.wait [#allocation3], 64  }
  0x45   :  { %376 = vsyncadd [#allocation3], 4294967232 }
  0x46   :  { %377 = dma.done.wait [#allocation6], 320  }
  0x47   :  { %378 = vsyncadd [#allocation6], 4294966976 }
  0x48   :  { %379 = dma.done.wait [#allocation9], 256  }
  0x49   :  { %380 = vsyncadd [#allocation9], 4294967040  ;;  %v389_v0 = vmov 0.0   ;;  %vm390_vm0 = vmmov 0   ;;  %v259_v1 = vld [vmem:[#allocation8] sm:$0xff]   ;;  %v260_v2 = vld [vmem:[#allocation7] sm:$0xff]  }
  0x4a   :  { %234 = vmatprep.subr.bf16.mxu0 %v389_v0  ;;  %242 = vmatprep.subr.bf16.mxu1 %v389_v0  ;;  %v261_v3 = vld [vmem:[#allocation8 + $0x8] sm:$0xff]   ;;  %v262_v4 = vld [vmem:[#allocation7 + $0x8] sm:$0xff]   ;;  %vm95_vm1 = vcmask 261120   ;;  %s391_s15 = smov [#allocation10]  }
  0x4b   :  { %238 = vmatprep.mubr.msk.bf16.mxu0 %vm390_vm0, %v389_v0  ;;  %246 = vmatprep.mubr.msk.bf16.mxu1 %vm390_vm0, %v389_v0  ;;  %v78_v5 = vld [vmem:[#allocation5] sm:$0xf]  ;;  %v73_v6 = vld [vmem:[#allocation2] sm:$0xf]  ;;  %s210_s16 = sshll.u32 %s391_s15, 4  ;;  %s211_s16 = int_to_ptr.vmem [resolvable:$true] %s210_s16 }
  0x4c   :  { %235 = vmatpush3.bf16.msra.mxu0 %v259_v1  ;;  %243 = vmatpush3.bf16.msra.mxu1 %v260_v2  ;;  %v227_v9 = vld [vmem:[%s489_s4] ss:$0 sm:$0xff]  ;;  %s353_s17 = scalar_lea.vmem %s211_s16, 128  ;;  %p358_p5 = scmp.lt.s32.totalorder %s211_s16, %s211_s16 }
  0x4d   :  { %236 = vmatprep.subr.bf16.mxu0 %v389_v0  ;;  %244 = vmatprep.subr.bf16.mxu1 %v389_v0  ;;  %p354_p4 = scmp.ne.s32.totalorder %s211_s16, %s353_s17  ;;  %p359_p6 = scmp.lt.s32.totalorder %s353_s17, %s353_s17 }
  0x4f   :  { %p360_p7 = por %p359_p6, %p358_p5 }
  0x50   :  { %237 = vmatpush3.bf16.msra.mxu0 %v261_v3  ;;  %245 = vmatpush3.bf16.msra.mxu1 %v262_v4 }
  0x51   :  { %p361_p8 = pnand %p360_p7, %p354_p4 }
  0x53   :  { %239 = vmatmul.mubr.msk.bf16.vlgmr.msra.gmra.mrb[0].mxu0 %vm95_vm1, %v78_v5  ;;  %247 = vmatmul.mubr.msk.bf16.vlgmr.msra.gmra.mrb[0].mxu1 %vm95_vm1, %v73_v6 }
 0x126   :  { %v133_v7 = vpop.f32.mrb[0].mxu0  ;;  %v188_v8 = vpop.f32.mrb[0].mxu1 }
 0x127   :  { %v240_v10 = vpop.f32.mrb[1].mxu0  ;;  %v189_v11 = vadd.f32 %v188_v8, %v133_v7  ;;  %v248_v12 = vpop.f32.mrb[1].mxu1 }
 0x128   :  { %v136_v13 = vpop.f32.mrb[2].mxu0  ;;  %v191_v14 = vpop.f32.mrb[2].mxu1 }
 0x129   :  { %v241_v15 = vpop.f32.mrb[3].mxu0  ;;  %v201_v16 = vadd.f32 %v227_v9, %v189_v11  ;;  %v249_v17 = vpop.f32.mrb[3].mxu1 }
 0x12b   :  { %263 = vtanh.f32 %v201_v16 }
 0x135   :  { %v264_v18 = vpop.eup %263 }
 0x136   :  { %203 = vst [vmem:[#allocation10] sm:$0xff] %v264_v18 }
 0x137   :  { %364 = shalt.err (!%p361_p8)
}
 0x138   :  { %s365_s19 = scalar_lea.hbm %s490_s5, 128 }
 0x139   :  { %p366_p9 = scmp.ne.s32.totalorder %s490_s5, %s365_s19  ;;  %p369_p10 = scmp.lt.u32.totalorder %s365_s19, %s490_s5 }
 0x13b   :  { %p371_p11 = pnand %p369_p10, %p366_p9 }
 0x13d   :  { %374 = shalt.err (!%p371_p11)
}
 0x13e   :  { %213 = dma.vmem_to_hbm [thread:$0]  %s211_s16, 128, %s490_s5, [#allocation4]  }
 0x13f   :  { %381 = dma.done.wait [#allocation4], 128  }
 0x140   :  { %382 = vsyncadd [#allocation4], 4294967168 }
 0x141   :  { %217 = vsyncpa [#allocation3], 1 }
 0x142   :  { %218 = vsyncpa [#allocation6], 1 }
 0x143   :  { %219 = vsyncpa [#allocation9], 1 }
 0x144   :  { %220 = vsyncpa [#allocation4], 1 }

</bundles_post_ra>
